<compile_context>
chip_gen: v7x
topology: tpu7x:2x2x1
jax: 0.10.0
libtpu: 0.0.40
codegen_flags: <defaults>
</compile_context>

<pallas_src>
import functools

import jax
import jax.numpy as jnp
from jax.experimental import pallas as pl
from jax.experimental.pallas import tpu as pltpu


DENSE_HEADS = {"heatmap": 3, "offset_2d": 2, "size_2d": 2}


# ----------------------------------------------------------------------------
# Pallas kernel: fused (conv3x3 + bias + ReLU + 1x1 conv + bias) for all heads.
# One grid step processes one batch element in channel-first flat-spatial form.
# ----------------------------------------------------------------------------
def _fused_heads_kernel(x_ref, w1_ref, b1_ref, w2_ref, b2_ref, out_ref, *, wp, s):
    # x_ref  : (1, Cin, Sext)  bf16  zero-padded, row-major flattened plane
    # w1_ref : (Cmid_total, 9*Cin) bf16  fused 3x3 weights, K ordered (dy,dx,c)
    # b1_ref : (Cmid_total, 1) f32
    # w2_ref : (Cout_total, Cmid_total) bf16  block-diagonal fused 1x1 weights
    # b2_ref : (Cout_total, 1) f32
    # out_ref: (1, Cout_total, S) f32  outputs on the padded flat grid
    x = x_ref[0]                                   # (Cin, Sext)

    # im2col along K: 9 lane-shifted views of the flat plane, taps (dy, dx).
    taps = []
    for dy in range(3):
        for dx in range(3):
            t = dy * wp + dx
            taps.append(x[:, t:t + s])             # (Cin, S)
    patch = jnp.concatenate(taps, axis=0)          # (9*Cin, S)

    # Single K=9*Cin matmul for all heads' 3x3 convs (f32 accumulation).
    hid = jnp.dot(w1_ref[...], patch, preferred_element_type=jnp.float32)
    hid = jnp.maximum(hid + b1_ref[...], 0.0)      # bias + ReLU in f32

    # Block-diagonal 1x1 conv for all heads; lane-dense (Cout_total, S) write.
    out = jnp.dot(w2_ref[...], hid.astype(w2_ref.dtype),
                  preferred_element_type=jnp.float32) + b2_ref[...]
    out_ref[0] = out


def gup_dense_heads_pallas(features_nchw, fused):
    """Run all fused GUP dense heads in one pallas_call. Returns (N, Cout_total, H, W)."""
    w1_t, b1, w2_t, b2 = fused
    N, Cin, H, W = features_nchw.shape
    Hp, Wp = H + 2, W + 2
    S = Hp * Wp
    max_t = 2 * Wp + 2                  # largest tap offset (dy=2, dx=2)
    Sext = S + max_t                    # extra zero lanes so tap slices stay in-bounds
    Cmid_total = w1_t.shape[0]
    Cout_total = w2_t.shape[0]

    # Glue (done once for all heads): SAME-pad spatially, flatten spatial to
    # lanes (free row-major reshape), append the tap-slack zeros, cast to bf16.
    x_pad = jnp.pad(features_nchw, ((0, 0), (0, 0), (1, 1), (1, 1)))
    x_flat = x_pad.reshape(N, Cin, S)
    x_flat = jnp.pad(x_flat, ((0, 0), (0, 0), (0, max_t))).astype(jnp.bfloat16)

    kernel = functools.partial(_fused_heads_kernel, wp=Wp, s=S)
    out_flat = pl.pallas_call(
        kernel,
        out_shape=jax.ShapeDtypeStruct((N, Cout_total, S), jnp.float32),
        grid_spec=pltpu.PrefetchScalarGridSpec(
            num_scalar_prefetch=0,
            grid=(N,),
            in_specs=[
                pl.BlockSpec((1, Cin, Sext), lambda n: (n, 0, 0)),
                pl.BlockSpec((Cmid_total, 9 * Cin), lambda n: (0, 0)),
                pl.BlockSpec((Cmid_total, 1), lambda n: (0, 0)),
                pl.BlockSpec((Cout_total, Cmid_total), lambda n: (0, 0)),
                pl.BlockSpec((Cout_total, 1), lambda n: (0, 0)),
            ],
            out_specs=pl.BlockSpec((1, Cout_total, S), lambda n: (n, 0, 0)),
        ),
        compiler_params=pltpu.CompilerParams(
            dimension_semantics=("parallel",)),
    )(x_flat, w1_t, b1, w2_t, b2)

    # Outputs are already channel-first; just drop the 1-pixel halo rows/cols
    # of the padded flat grid (the extra positions hold harmless garbage).
    out = out_flat.reshape(N, Cout_total, Hp, Wp)[:, :, :H, :W]
    return out


# ----------------------------------------------------------------------------
# Parameter construction (matches the PyTorch per-head layout) + one-time fuse.
# ----------------------------------------------------------------------------
def init_gup_head_params(key, in_channels, head_conv=32):
    params = {}
    for name, out_ch in DENSE_HEADS.items():
        key, k1, k2 = jax.random.split(key, 3)
        w1 = 0.1 * jax.random.normal(k1, (3, 3, in_channels, head_conv),
                                     dtype=jnp.float32)                # HWIO
        b1 = jnp.zeros((head_conv,), dtype=jnp.float32)
        w2 = 0.1 * jax.random.normal(k2, (head_conv, out_ch),
                                     dtype=jnp.float32)
        # GUPNet initializes the heatmap head's final bias to -2.19.
        b2 = jnp.full((out_ch,), -2.19 if name == "heatmap" else 0.0,
                      dtype=jnp.float32)
        params[name] = (w1, b1, w2, b2)
    return params


def fuse_gup_head_params(params, in_channels):
    """Fuse per-head weights into single kernel operands (hoisted, done once)."""
    w1_cols, b1_all, b2_all = [], [], []
    for name in DENSE_HEADS:
        w1, b1, w2, b2 = params[name]
        w1_cols.append(w1.reshape(9 * in_channels, -1))   # (9*Cin, Cmid_h)
        b1_all.append(b1)
        b2_all.append(b2)
    w1_t = jnp.concatenate(w1_cols, axis=1).T             # (Cmid_total, 9*Cin)
    b1_all = jnp.concatenate(b1_all)[:, None]             # (Cmid_total, 1)
    b2_all = jnp.concatenate(b2_all)[:, None]             # (Cout_total, 1)

    cmid_total = w1_t.shape[0]
    cout_total = b2_all.shape[0]
    w2_t = jnp.zeros((cout_total, cmid_total), jnp.float32)   # block-diagonal
    co = cm = 0
    for name in DENSE_HEADS:
        w2 = params[name][2]                               # (Cmid_h, Cout_h)
        cmid_h, cout_h = w2.shape
        w2_t = w2_t.at[co:co + cout_h, cm:cm + cmid_h].set(w2.T)
        co += cout_h
        cm += cmid_h

    return (w1_t.astype(jnp.bfloat16), b1_all,
            w2_t.astype(jnp.bfloat16), b2_all)


def gup_head_forward(features_nchw, fused):
    """Forward pass of GUPHead (dense predictor heads). Returns dict of NCHW maps."""
    out = gup_dense_heads_pallas(features_nchw, fused)    # (N, 7, H, W)
    outputs = {}
    off = 0
    for name, c in DENSE_HEADS.items():
        outputs[name] = out[:, off:off + c]
        off += c
    return outputs


# Pure-JAX f32 reference for correctness checking (per head, NCHW).
def _ref_head(x_nchw, w1, b1, w2, b2):
    y = jax.lax.conv_general_dilated(
        x_nchw, w1, window_strides=(1, 1), padding="SAME",
        dimension_numbers=("NCHW", "HWIO", "NCHW"))
    y = jax.nn.relu(y + b1[None, :, None, None])
    z = jax.lax.conv_general_dilated(
        y, w2[None, None], window_strides=(1, 1), padding="SAME",
        dimension_numbers=("NCHW", "HWIO", "NCHW"))
    return z + b2[None, :, None, None]


if __name__ == "__main__":
    key = jax.random.PRNGKey(0)
    key, kx = jax.random.split(key)

    # Small synthetic shapes consistent with the module: features NCHW.
    N, C, H, W = 2, 4, 16, 16
    features = jax.random.normal(kx, (N, C, H, W), dtype=jnp.float32)

    params = init_gup_head_params(key, in_channels=C, head_conv=32)
    fused = fuse_gup_head_params(params, in_channels=C)

    outputs = gup_head_forward(features, fused)
    outputs = jax.tree_util.tree_map(jax.block_until_ready, outputs)

    # Verify against the pure-JAX f32 reference (bf16 matmul operands in the
    # kernel -> loosened tolerance).
    for name, (w1, b1, w2, b2) in params.items():
        ref = _ref_head(features, w1, b1, w2, b2)
        assert outputs[name].shape == (N, DENSE_HEADS[name], H, W), name
        assert jnp.allclose(outputs[name], ref, rtol=2e-2, atol=2e-2), name

    print("KERNEL_OK")
</pallas_src>

<mosaic_0001>
module attributes {stable_mosaic.version = 11 : i64} {
  func.func @_fused_heads_kernel(%arg0: i32, %arg1: memref<1x4x362xbf16, #tpu.memory_space<vmem>>, %arg2: memref<96x36xbf16, #tpu.memory_space<vmem>>, %arg3: memref<96x1xf32, #tpu.memory_space<vmem>>, %arg4: memref<7x96xbf16, #tpu.memory_space<vmem>>, %arg5: memref<7x1xf32, #tpu.memory_space<vmem>>, %arg6: memref<1x7x324xf32, #tpu.memory_space<vmem>>) attributes {dimension_semantics = [#tpu.dimension_semantics<parallel>], iteration_bounds = array<i64: 2>, scalar_prefetch = 0 : i64, scratch_operands = 0 : i64, tpu.core_type = #tpu.core_type<tc>, window_params = [{transform_indices = @transform_0, window_bounds = array<i64: 1, 4, 362>}, {pipeline_mode = #tpu.pipeline_mode<synchronous>, transform_indices = @transform_1, window_bounds = array<i64: 96, 36>}, {pipeline_mode = #tpu.pipeline_mode<synchronous>, transform_indices = @transform_2, window_bounds = array<i64: 96, 1>}, {pipeline_mode = #tpu.pipeline_mode<synchronous>, transform_indices = @transform_3, window_bounds = array<i64: 7, 96>}, {pipeline_mode = #tpu.pipeline_mode<synchronous>, transform_indices = @transform_4, window_bounds = array<i64: 7, 1>}, {transform_indices = @transform_5, window_bounds = array<i64: 1, 7, 324>}]} {
    %c0 = arith.constant 0 : index
    %c0_0 = arith.constant 0 : index
    %c0_1 = arith.constant 0 : index
    %0 = vector.load %arg1[%c0, %c0_0, %c0_1] : memref<1x4x362xbf16, #tpu.memory_space<vmem>>, vector<1x4x362xbf16>
    %1 = vector.shape_cast %0 : vector<1x4x362xbf16> to vector<4x362xbf16>
    %2 = vector.extract_strided_slice %1 {offsets = [0, 0], sizes = [4, 324], strides = [1, 1]} : vector<4x362xbf16> to vector<4x324xbf16>
    %3 = vector.extract_strided_slice %1 {offsets = [0, 1], sizes = [4, 324], strides = [1, 1]} : vector<4x362xbf16> to vector<4x324xbf16>
    %4 = vector.extract_strided_slice %1 {offsets = [0, 2], sizes = [4, 324], strides = [1, 1]} : vector<4x362xbf16> to vector<4x324xbf16>
    %5 = vector.extract_strided_slice %1 {offsets = [0, 18], sizes = [4, 324], strides = [1, 1]} : vector<4x362xbf16> to vector<4x324xbf16>
    %6 = vector.extract_strided_slice %1 {offsets = [0, 19], sizes = [4, 324], strides = [1, 1]} : vector<4x362xbf16> to vector<4x324xbf16>
    %7 = vector.extract_strided_slice %1 {offsets = [0, 20], sizes = [4, 324], strides = [1, 1]} : vector<4x362xbf16> to vector<4x324xbf16>
    %8 = vector.extract_strided_slice %1 {offsets = [0, 36], sizes = [4, 324], strides = [1, 1]} : vector<4x362xbf16> to vector<4x324xbf16>
    %9 = vector.extract_strided_slice %1 {offsets = [0, 37], sizes = [4, 324], strides = [1, 1]} : vector<4x362xbf16> to vector<4x324xbf16>
    %10 = vector.extract_strided_slice %1 {offsets = [0, 38], sizes = [4, 324], strides = [1, 1]} : vector<4x362xbf16> to vector<4x324xbf16>
    %11 = tpu.concatenate %2, %3, %4, %5, %6, %7, %8, %9, %10 in 0 : vector<4x324xbf16>, vector<4x324xbf16>, vector<4x324xbf16>, vector<4x324xbf16>, vector<4x324xbf16>, vector<4x324xbf16>, vector<4x324xbf16>, vector<4x324xbf16>, vector<4x324xbf16> -> vector<36x324xbf16>
    %c0_2 = arith.constant 0 : index
    %c0_3 = arith.constant 0 : index
    %12 = vector.load %arg2[%c0_2, %c0_3] : memref<96x36xbf16, #tpu.memory_space<vmem>>, vector<96x36xbf16>
    %cst = arith.constant dense<0.000000e+00> : vector<96x324xf32>
    %13 = tpu.matmul %12, %11, %cst {dimension_numbers = #tpu.dot_dimension_numbers<[1], [0], [0], [1], [0, 0, 1, 1], [], []>} : vector<96x36xbf16>, vector<36x324xbf16>, vector<96x324xf32> -> vector<96x324xf32>
    %c0_4 = arith.constant 0 : index
    %c0_5 = arith.constant 0 : index
    %14 = vector.load %arg3[%c0_4, %c0_5] : memref<96x1xf32, #tpu.memory_space<vmem>>, vector<96x1xf32>
    %15 = vector.broadcast %14 : vector<96x1xf32> to vector<96x324xf32>
    %16 = arith.addf %13, %15 : vector<96x324xf32>
    %cst_6 = arith.constant 0.000000e+00 : f32
    %17 = vector.broadcast %cst_6 : f32 to vector<96x324xf32>
    %18 = arith.maximumf %16, %17 : vector<96x324xf32>
    %c0_7 = arith.constant 0 : index
    %c0_8 = arith.constant 0 : index
    %19 = vector.load %arg4[%c0_7, %c0_8] : memref<7x96xbf16, #tpu.memory_space<vmem>>, vector<7x96xbf16>
    %20 = arith.truncf %18 : vector<96x324xf32> to vector<96x324xbf16>
    %cst_9 = arith.constant dense<0.000000e+00> : vector<7x324xf32>
    %21 = tpu.matmul %19, %20, %cst_9 {dimension_numbers = #tpu.dot_dimension_numbers<[1], [0], [0], [1], [0, 0, 1, 1], [], []>} : vector<7x96xbf16>, vector<96x324xbf16>, vector<7x324xf32> -> vector<7x324xf32>
    %c0_10 = arith.constant 0 : index
    %c0_11 = arith.constant 0 : index
    %22 = vector.load %arg5[%c0_10, %c0_11] : memref<7x1xf32, #tpu.memory_space<vmem>>, vector<7x1xf32>
    %23 = vector.broadcast %22 : vector<7x1xf32> to vector<7x324xf32>
    %24 = arith.addf %21, %23 : vector<7x324xf32>
    %c0_12 = arith.constant 0 : index
    %c0_13 = arith.constant 0 : index
    %c0_14 = arith.constant 0 : index
    %25 = vector.load %arg6[%c0_12, %c0_13, %c0_14] : memref<1x7x324xf32, #tpu.memory_space<vmem>>, vector<1x7x324xf32>
    %26 = vector.shape_cast %25 : vector<1x7x324xf32> to vector<7x324xf32>
    %27 = vector.shape_cast %24 : vector<7x324xf32> to vector<1x7x324xf32>
    tpu.vector_store %arg6[%c0_12, %c0_13, %c0_14], %27 {strides = array<i32>} : memref<1x7x324xf32, #tpu.memory_space<vmem>>, vector<1x7x324xf32>,
    return
  }
  func.func @transform_0(%arg0: i32) -> (i32, i32, i32) {
    %c0_i32 = arith.constant 0 : i32
    %c0_i32_0 = arith.constant 0 : i32
    %c0_i32_1 = arith.constant 0 : i32
    return %arg0, %c0_i32, %c0_i32_0 : i32, i32, i32
  }
  func.func @transform_1(%arg0: i32) -> (i32, i32) {
    %c0_i32 = arith.constant 0 : i32
    %c0_i32_0 = arith.constant 0 : i32
    %c0_i32_1 = arith.constant 0 : i32
    return %c0_i32, %c0_i32_0 : i32, i32
  }
  func.func @transform_2(%arg0: i32) -> (i32, i32) {
    %c0_i32 = arith.constant 0 : i32
    %c0_i32_0 = arith.constant 0 : i32
    %c0_i32_1 = arith.constant 0 : i32
    return %c0_i32, %c0_i32_0 : i32, i32
  }
  func.func @transform_3(%arg0: i32) -> (i32, i32) {
    %c0_i32 = arith.constant 0 : i32
    %c0_i32_0 = arith.constant 0 : i32
    %c0_i32_1 = arith.constant 0 : i32
    return %c0_i32, %c0_i32_0 : i32, i32
  }
  func.func @transform_4(%arg0: i32) -> (i32, i32) {
    %c0_i32 = arith.constant 0 : i32
    %c0_i32_0 = arith.constant 0 : i32
    %c0_i32_1 = arith.constant 0 : i32
    return %c0_i32, %c0_i32_0 : i32, i32
  }
  func.func @transform_5(%arg0: i32) -> (i32, i32, i32) {
    %c0_i32 = arith.constant 0 : i32
    %c0_i32_0 = arith.constant 0 : i32
    %c0_i32_1 = arith.constant 0 : i32
    return %arg0, %c0_i32, %c0_i32_0 : i32, i32, i32
  }
}

</mosaic_0001>

<bundles_post_ra>
// kernel: tpu_custom_call.1
= control target key start
LH: loop header
LB: loop body
LE: loop exit
PB: predicated region body
PF: predicated region fallthrough
CT: control target
= control target key end

     0   :  { %s1069_s18 = smov 0   ;;  %s1289_s0 = inlined_call_operand.vmem [shape: bf16[2,4,362], index: 0, kind: input, shape index: {}]   ;;  %s1290_s1 = inlined_call_operand.vmem [shape: bf16[96,36], index: 1, kind: input, shape index: {}]   ;;  %s1291_s2 = inlined_call_operand.vmem [shape: f32[96,1], index: 2, kind: input, shape index: {}]   ;;  %s1292_s3 = inlined_call_operand.vmem [shape: bf16[7,96], index: 3, kind: input, shape index: {}]   ;;  %s1293_s4 = inlined_call_operand.vmem [shape: f32[7,1], index: 4, kind: input, shape index: {}]   ;;  %s1294_s5 = inlined_call_operand.vmem [shape: f32[2,7,324], index: 5, kind: output, shape index: {}]  }
   0x1 LB: > { %s900_s19 = sadd.s32 4294967295, %s1025_s18   ;;  %p904_p0 = scmp.ge.s32.totalorder %s1025_s18, 1  ;;  %s1025_s18 = sphi %s1069_s18, %s15_s18  }
   0x2   : > { %p187_p1 = scmp.lt.s32.totalorder %s1025_s18, 3 }
   0x4   : > { %p188_p2 = pnand %p904_p0, %p187_p1 }
   0x5   : > { %p215_p3 = scmp.lt.s32.totalorder (!%p188_p2), %s900_s19, 1  ;;  %v232_v0 = vlaneseq (!%p188_p2)  ;;  %v1027_v1 = vmov (!%p188_p2), 1983009808   ;;  %s1028_s24 = smov (!%p188_p2), 126   ;;  %v1034_v17 = vmov (!%p188_p2), 0   ;;  %v392_v18 = vld [vmem:[%s1291_s2 + $0x8] sm:$0xff] (!%p188_p2) }
   0x6   : > { %191 = sbr.rel (%p188_p2) target bundleno = 661 (0x295), region = 40  ;;  %v230_v2 = vunpack.c.l.s4 (!%p188_p2), %v1027_v1  ;;  %s1029_s25 = smov (!%p188_p2), 127   ;;  %553 = vmatprep.mubr.bf16.mxu0 (!%p188_p2), %v1034_v17  ;;  %603 = vmatprep.mubr.bf16.mxu1 (!%p188_p2), %v1034_v17  ;;  %v391_v19 = vld [vmem:[%s1291_s2] sm:$0xff] (!%p188_p2)  ;;  %v393_v20 = vld [vmem:[%s1291_s2 + $0x10] sm:$0xff] (!%p188_p2)  ;;  %v394_v21 = vld [vmem:[%s1291_s2 + $0x18] sm:$0xff] (!%p188_p2)  ;;  %vm259_vm0 = vcmask (!%p188_p2), 1039360  }
   0x7   : > { %v233_v3 = vshrl.u32 (!%p188_p2), %v232_v0, 7  ;;  %s1030_s26 = smov (!%p188_p2), 110   ;;  %s1031_s27 = smov (!%p188_p2), 109   ;;  %1010 = vset.pattern.permute.xlu1 (!%p188_p2), %v1034_v17  ;;  %1009 = vset.pattern.permute.xlu0 (!%p188_p2), %v1034_v17  ;;  %v395_v22 = vld [vmem:[%s1291_s2 + $0x20] sm:$0xff] (!%p188_p2)  ;;  %v396_v23 = vld [vmem:[%s1291_s2 + $0x28] sm:$0xff] (!%p188_p2)  ;;  %v397_v24 = vld [vmem:[%s1291_s2 + $0x30] sm:$0xff] (!%p188_p2) }
   0x8   : > { %v231_v4 = vunpack.c.0.s8 (!%p188_p2), %v230_v2  ;;  %s1032_s28 = smov (!%p188_p2), 108   ;;  %s1033_s29 = smov (!%p188_p2), 92   ;;  %v398_v25 = vld [vmem:[%s1291_s2 + $0x38] sm:$0xff] (!%p188_p2)  ;;  %v399_v26 = vld [vmem:[%s1291_s2 + $0x40] sm:$0xff] (!%p188_p2)  ;;  %v400_v27 = vld [vmem:[%s1291_s2 + $0x48] sm:$0xff] (!%p188_p2)  ;;  %vm280_vm1 = vcmask (!%p188_p2), 900096  }
   0x9   : > { %s1035_s30 = smov (!%p188_p2), 91   ;;  %s1036_s6 = smov (!%p188_p2), 90   ;;  %v401_v28 = vld [vmem:[%s1291_s2 + $0x50] sm:$0xff] (!%p188_p2)  ;;  %v402_v29 = vld [vmem:[%s1291_s2 + $0x58] sm:$0xff] (!%p188_p2)  ;;  %v750_v30 = vld [vmem:[%s1293_s4] sm:$0x7f] (!%p188_p2) }
   0xa   : > { %v234_v5 = vsub.s32 (!%p188_p2), %v231_v4, %v233_v3  ;;  %vm270_vm2 = vcmask (!%p188_p2), 1031168   ;;  %vm328_vm3 = vcmask (!%p188_p2), 1041408   ;;  %vm345_vm4 = vcmask (!%p188_p2), 1045504  }
   0xb   : > { %vm338_vm5 = vcmask (!%p188_p2), 1043456   ;;  %vm298_vm6 = vcmask (!%p188_p2), 883712   ;;  %vm307_vm7 = vcmask (!%p188_p2), 752640   ;;  %vm289_vm8 = vcmask (!%p188_p2), 891904  }
   0xc   : > { %vm316_vm9 = vcmask (!%p188_p2), 744448   ;;  %vm325_vm10 = vcmask (!%p188_p2), 736256   ;;  %vm493_vm11 = vcmask (!%p188_p2), 293888   ;;  %vm1038_vm12 = vmmov (!%p188_p2), 0  }
   0xd   : > { %s1296_s19 = smov (!%p215_p3, %s900_s19), 1  ;;  %vm756_vm13 = vcmask 785408   ;;  %vm843_vm14 = vcmask 555008  }
   0xe   : > { %s987_s20 = smul.u32 6, %s1296_s19 }
  0x10   : > { %s219_s23 = scalar_lea.vmem %s1289_s0, %s987_s20 }
  0x11   : > { %v226_v6 = vld [vmem:[%s219_s23] sm:$0x3f] }
  0x12   : > { %v1083_v7 = vrot.slane %v226_v6, %v234_v5  ;;  %v244_v8 = vcombine.low %v226_v6, %v226_v6  ;;  %v228_v10 = vcombine.high %v226_v6, %v226_v6 }
  0x14   : > { %266 = vrot.lane.b32.xlu1 %v1083_v7, %s1028_s24  ;;  %257 = vrot.lane.b32.xlu0 %v1083_v7, %s1029_s25  ;;  %v251_v9 = vrot.slane %v244_v8, %v234_v5  ;;  %v262_v12 = vcombine.low %v1083_v7, %v1083_v7  ;;  %v1089_v13 = vrot.slane %v228_v10, %v234_v5 }
  0x15   : > { %v1095_v15 = vcombine.high %v1083_v7, %v1083_v7 }
  0x16   : > { %v252_v11 = vcombine.high %v251_v9, %v251_v9  ;;  %v263_v14 = vcombine.low %v1089_v13, %v1089_v13  ;;  %v273_v16 = vcombine.low %v251_v9, %v251_v9 }
  0x18   : > { %253 = vrot.lane.b32.xlu1 %v251_v9, %s1029_s25  ;;  %276 = vrot.lane.b32.xlu0 %v251_v9, %s1030_s26 }
  0x1c   : > { %255 = vrot.lane.b32.xlu0 %v252_v11, %s1029_s25  ;;  %264 = vrot.lane.b32.xlu1 %v262_v12, %s1028_s24 }
  0x20   : > { %278 = vrot.lane.b32.xlu1 %v262_v12, %s1030_s26  ;;  %268 = vrot.lane.b32.xlu0 %v263_v14, %s1028_s24 }
  0x24   : > { %285 = vrot.lane.b32.xlu1 %v1095_v15, %s1031_s27  ;;  %274 = vrot.lane.b32.xlu0 %v273_v16, %s1030_s26  ;;  %s988_s26 = smul.u32 24, %s1296_s19 }
  0x28   : > { %294 = vrot.lane.b32.xlu1 %v252_v11, %s1032_s28  ;;  %287 = vrot.lane.b32.xlu0 %v1089_v13, %s1031_s27 }
  0x2c   : > { %283 = vrot.lane.b32.xlu1 %v1083_v7, %s1031_s27  ;;  %296 = vrot.lane.b32.xlu0 %v1083_v7, %s1032_s28 }
  0x30   : > { %303 = vrot.lane.b32.xlu1 %v1083_v7, %s1033_s29  ;;  %292 = vrot.lane.b32.xlu0 %v251_v9, %s1032_s28 }
  0x34   : > { %301 = vrot.lane.b32.xlu1 %v262_v12, %s1033_s29  ;;  %305 = vrot.lane.b32.xlu0 %v263_v14, %s1033_s29  ;;  %s224_s29 = scalar_lea.vmem %s1294_s5, %s988_s26 }
  0x38   : > { %314 = vrot.lane.b32.xlu1 %v262_v12, %s1035_s30  ;;  %312 = vrot.lane.b32.xlu0 %v251_v9, %s1035_s30 }
  0x3c   : > { %319 = vrot.lane.b32.xlu1 %v1083_v7, %s1036_s6  ;;  %310 = vrot.lane.b32.xlu0 %v273_v16, %s1035_s30 }
  0x40   : > { %323 = vrot.lane.b32.xlu1 %v1089_v13, %s1036_s6  ;;  %321 = vrot.lane.b32.xlu0 %v1095_v15, %s1036_s6 }
  0x44   : > { %410 = vperm.xlu1 %1010, %v392_v18   ;;  %405 = vperm.xlu0 %1009, %v391_v19  }
  0x48   : > { %415 = vperm.xlu1 %1010, %v393_v20   ;;  %420 = vperm.xlu0 %1009, %v394_v21  }
  0x4c   : > { %425 = vperm.xlu1 %1010, %v395_v22   ;;  %430 = vperm.xlu0 %1009, %v396_v23  }
  0x50   : > { %435 = vperm.xlu1 %1010, %v397_v24   ;;  %440 = vperm.xlu0 %1009, %v398_v25   ;;  %v1013_v24 = vld [vmem:[%s1290_s1] sm:$0xff]  }
  0x54   : > { %445 = vperm.xlu1 %1010, %v399_v26   ;;  %450 = vperm.xlu0 %1009, %v400_v27  }
  0x58   : > { %455 = vperm.xlu1 %1010, %v401_v28   ;;  %460 = vperm.xlu0 %1009, %v402_v29   ;;  %v1015_v29 = vld [vmem:[%s1290_s1 + $0x8] sm:$0xff]  }
  0x5c   : > { %753 = vperm.xlu1 %1010, %v750_v30  }
  0x86   : > { %v267_v31 = vpop.permute.xlu1 %266  ;;  %v1148_v32 = vpop.permute.xlu0 %257 }
  0x87   : > { %v337_v16 = vsel %vm328_vm3, %v1089_v13, %v1148_v32  ;;  %v1014_v13 = vld [vmem:[%s1290_s1 + $0x28] sm:$0xff]  }
  0x8a   : > { %v254_v33 = vpop.permute.xlu1 %253  ;;  %v277_v34 = vpop.permute.xlu0 %276 }
  0x8e   : > { %v256_v35 = vpop.permute.xlu0 %255  ;;  %v265_v36 = vpop.permute.xlu1 %264 }
  0x8f   : > { %v261_v37 = vsel %vm259_vm0, %v256_v35, %v1148_v32  ;;  %v260_v38 = vsel %vm259_vm0, %v254_v33, %v256_v35  ;;  %v271_v45 = vsel %vm270_vm2, %v265_v36, %v267_v31  ;;  %v1017_v32 = vld [vmem:[%s1290_s1 + $0x18] sm:$0xff]   ;;  %v1018_v33 = vld [vmem:[%s1290_s1 + $0x20] sm:$0xff]  }
  0x90   : > { %v334_v41 = vsel %vm328_vm3, %v1095_v15, %v261_v37  ;;  %v331_v44 = vsel %vm328_vm3, %v1083_v7, %v260_v38 }
  0x91   : > { %v340_v51 = vsel %vm338_vm5, %v331_v44, %v271_v45 }
  0x92   : > { %v1151_v39 = vpop.permute.xlu1 %278  ;;  %v269_v40 = vpop.permute.xlu0 %268 }
  0x93   : > { %v282_v42 = vsel %vm280_vm1, %v277_v34, %v1151_v39  ;;  %v272_v43 = vsel %vm270_vm2, %v267_v31, %v269_v40  ;;  %v344_v18 = vsel %vm338_vm5, %v337_v16, %v269_v40  ;;  %v1016_v31 = vld [vmem:[%s1290_s1 + $0x10] sm:$0xff]  }
  0x94   : > { %v342_v46 = vsel %vm338_vm5, %v334_v41, %v272_v43  ;;  %v353_v25 = vsel %vm345_vm4, %v344_v18, %v1151_v39 }
  0x95   : > { %v350_v47 = vsel %vm345_vm4, %v342_v46, %v282_v42 }
  0x96   : > { %v286_v48 = vpop.permute.xlu1 %285  ;;  %521 = vmatprep.subr.bf16.mxu0 %v350_v47  ;;  %980 = vmatprep.subr.bf16.mxu1 %v350_v47  ;;  %v275_v49 = vpop.permute.xlu0 %274 }
  0x97   : > { %v281_v50 = vsel %vm280_vm1, %v275_v49, %v277_v34  ;;  %v1037_v34 = vmov 0.0  }
  0x98   : > { %v347_v52 = vsel %vm345_vm4, %v340_v51, %v281_v50 }
  0x99   : > { %522 = vmatpush1.bf16.msra.mxu0 %v347_v52  ;;  %983 = vmatpush1.bf16.msra.mxu1 %v347_v52 }
  0x9a   : > { %v295_v53 = vpop.permute.xlu1 %294  ;;  %v288_v54 = vpop.permute.xlu0 %287 }
  0x9b   : > { %v291_v63 = vsel %vm289_vm8, %v286_v48, %v288_v54 }
  0x9e   : > { %v284_v55 = vpop.permute.xlu1 %283  ;;  %v297_v56 = vpop.permute.xlu0 %296 }
  0x9f   : > { %v300_v61 = vsel %vm298_vm6, %v295_v53, %v297_v56  ;;  %v290_v8 = vsel %vm289_vm8, %v284_v55, %v286_v48  ;;  %v363_v26 = vsel %vm328_vm3, %v288_v54, %v297_v56 }
  0xa0   : > { %v360_v0 = vsel %vm328_vm3, %v291_v63, %v300_v61 }
  0xa2   : > { %v304_v57 = vpop.permute.xlu1 %303  ;;  %v293_v58 = vpop.permute.xlu0 %292 }
  0xa3   : > { %v299_v3 = vsel %vm298_vm6, %v293_v58, %v295_v53 }
  0xa4   : > { %v357_v9 = vsel %vm328_vm3, %v290_v8, %v299_v3 }
  0xa6   : > { %v302_v59 = vpop.permute.xlu1 %301  ;;  %v306_v60 = vpop.permute.xlu0 %305 }
  0xa7   : > { %v309_v62 = vsel %vm307_vm7, %v304_v57, %v306_v60  ;;  %v308_v6 = vsel %vm307_vm7, %v302_v59, %v304_v57  ;;  %v369_v27 = vsel %vm338_vm5, %v363_v26, %v306_v60 }
  0xa8   : > { %v367_v5 = vsel %vm338_vm5, %v360_v0, %v309_v62  ;;  %v365_v14 = vsel %vm338_vm5, %v357_v9, %v308_v6 }
  0xaa   : > { %v315_v1 = vpop.permute.xlu1 %314  ;;  %v313_v2 = vpop.permute.xlu0 %312 }
  0xab   : > { %v318_v4 = vsel %vm316_vm9, %v313_v2, %v315_v1  ;;  %v377_v28 = vsel %vm345_vm4, %v369_v27, %v315_v1 }
  0xac   : > { %v374_v7 = vsel %vm345_vm4, %v367_v5, %v318_v4 }
  0xad   : > { %523 = vmatprep.subr.bf16.mxu0 %v374_v7  ;;  %981 = vmatprep.subr.bf16.mxu1 %v374_v7 }
  0xae   : > { %v320_v10 = vpop.permute.xlu1 %319  ;;  %v311_v11 = vpop.permute.xlu0 %310 }
  0xaf   : > { %v317_v12 = vsel %vm316_vm9, %v311_v11, %v313_v2 }
  0xb0   : > { %v371_v15 = vsel %vm345_vm4, %v365_v14, %v317_v12 }
  0xb1   : > { %524 = vmatpush1.bf16.msra.mxu0 %v371_v15  ;;  %984 = vmatpush1.bf16.msra.mxu1 %v371_v15 }
  0xb2   : > { %v324_v19 = vpop.permute.xlu1 %323  ;;  %v322_v20 = vpop.permute.xlu0 %321 }
  0xb3   : > { %v326_v21 = vsel %vm325_vm10, %v320_v10, %v322_v20  ;;  %v327_v22 = vsel %vm325_vm10, %v322_v20, %v324_v19  ;;  %v519_v30 = vsel %vm328_vm3, %v324_v19, 0 }
  0xb4   : > { %913 = vmatprep.subr.msk.bf16.mxu0 %vm328_vm3, %v327_v22  ;;  %982 = vmatprep.subr.msk.bf16.mxu1 %vm328_vm3, %v327_v22  ;;  %v513_v23 = vsel %vm328_vm3, %v326_v21, 0 }
  0xb5   : > { %526 = vmatpush1.bf16.msra.mxu0 %v513_v23  ;;  %985 = vmatpush1.bf16.msra.mxu1 %v513_v23 }
  0xb6   : > { %946 = vmatprep.subr.bf16.mxu1 %v353_v25  ;;  %964 = vmatprep.subr.bf16.mxu0 %v1037_v34 }
  0xb8   : > { %914 = vmatmul.mubr.msk.bf16.vlgmr.msra.gmra.mrb[0].mxu0 %vm493_vm11, %v1013_v24  ;;  %919 = vmatmul.mubr.msk.bf16.vlgmr.msra.gmra.mrb[0].mxu1 %vm493_vm11, %v1014_v13 }
  0xb9   : > { %947 = vmatpush3.bf16.msra.mxu1 %v353_v25  ;;  %563 = vmatprep.mubr.bf16.mxu0 %v1034_v17 }
  0xba   : > { %948 = vmatprep.subr.bf16.mxu1 %v377_v28  ;;  %952 = vmatprep.mubr.msk.bf16.mxu1 %vm493_vm11, %v1013_v24 }
  0xbd   : > { %949 = vmatpush3.bf16.msra.mxu1 %v377_v28 }
  0xbe   : > { %986 = vmatprep.subr.msk.bf16.mxu1 %vm328_vm3, %v324_v19 }
  0xc0   : > { %915 = vmatmul.mubr.msk.bf16.gmra.mrb[4].mxu0 %vm493_vm11, %v1015_v29 }
  0xc1   : > { %951 = vmatpush3.bf16.msra.mxu1 %v519_v30  ;;  %573 = vmatprep.mubr.bf16.mxu0 %v1034_v17 }
  0xc3   : > { %v1223_v35 = vpop.permute.xlu1 %410  ;;  %v406_v36 = vpop.permute.xlu0 %405 }
  0xc4   : > { %953 = vmatmul.mubr.msk.bf16.vlgmr.msra.gmra.mrb[4].mxu1 %vm493_vm11, %v1015_v29 }
  0xc5   : > { %956 = vmatprep.mubr.msk.bf16.mxu1 %vm493_vm11, %v1016_v31 }
  0xc7   : > { %v416_v37 = vpop.permute.xlu1 %415  ;;  %v421_v38 = vpop.permute.xlu0 %420 }
  0xc8   : > { %916 = vmatmul.mubr.msk.bf16.gmra.mrb[8].mxu0 %vm493_vm11, %v1016_v31 }
  0xc9   : > { %583 = vmatprep.mubr.bf16.mxu0 %v1034_v17 }
  0xcb   : > { %v1225_v39 = vpop.permute.xlu1 %425  ;;  %v1227_v40 = vpop.permute.xlu0 %430 }
  0xcc   : > { %957 = vmatmul.mubr.msk.bf16.gmra.mrb[8].mxu1 %vm493_vm11, %v1017_v32 }
  0xcd   : > { %960 = vmatprep.mubr.msk.bf16.mxu1 %vm493_vm11, %v1018_v33 }
  0xcf   : > { %v1229_v41 = vpop.permute.xlu1 %435 }
  0xd0   : > { %917 = vmatmul.mubr.msk.bf16.gmra.mrb[12].mxu0 %vm493_vm11, %v1017_v32 }
  0xd1   : > { %593 = vmatprep.mubr.bf16.mxu0 %v1034_v17 }
  0xd3   : > { %v1233_v42 = vpop.permute.xlu1 %445 }
  0xd4   : > { %961 = vmatmul.mubr.msk.bf16.gmra.mrb[12].mxu1 %vm493_vm11, %v1014_v13 }
  0xd5   : > { %792 = vmatprep.mubr.bf16.mxu1 %v1034_v17  ;;  %v1231_v17 = vpop.permute.xlu0 %440 }
  0xd7   : > { %v1237_v44 = vpop.permute.xlu1 %455 }
  0xd8   : > { %918 = vmatmul.mubr.msk.bf16.gmra.mrb[16].mxu0 %vm493_vm11, %v1018_v33 }
  0xd9   : > { %976 = vmatprep.mubr.msk.bf16.mxu0 %vm1038_vm12, %v1037_v34  ;;  %v1235_v43 = vpop.permute.xlu0 %450 }
  0xdd   : > { %v1239_v45 = vpop.permute.xlu0 %460 }
 0x18b   : > { %v605_v46 = vpop.f32.mrb[0].mxu1  ;;  %v555_v47 = vpop.f32.mrb[0].mxu0 }
 0x18c   : > { %v606_v48 = vadd.f32 %v605_v46, %v1237_v44  ;;  %v607_v49 = vpop.f32.mrb[1].mxu1  ;;  %v556_v50 = vadd.f32 %v555_v47, %v406_v36  ;;  %v557_v51 = vpop.f32.mrb[1].mxu0 }
 0x18d   : > { %v608_v52 = vadd.f32 %v607_v49, %v1237_v44  ;;  %v609_v53 = vpop.f32.mrb[2].mxu1  ;;  %v558_v54 = vadd.f32 %v557_v51, %v406_v36  ;;  %v559_v55 = vpop.f32.mrb[2].mxu0 }
 0x18e   : > { %v725_v56 = vmax.f32 %v606_v48, 0.0  ;;  %v610_v57 = vadd.f32 %v609_v53, %v1239_v45  ;;  %v611_v58 = vpop.f32.mrb[3].mxu1  ;;  %v560_v59 = vadd.f32 %v559_v55, %v1223_v35  ;;  %v561_v60 = vpop.f32.mrb[3].mxu0  ;;  %v695_v1 = vmax.f32 %v556_v50, 0.0 }
 0x18f   : > { %v726_v61 = vmax.f32 %v608_v52, 0.0  ;;  %v612_v62 = vadd.f32 %v611_v58, %v1239_v45  ;;  %v562_v63 = vadd.f32 %v561_v60, %v1223_v35  ;;  %v696_v4 = vmax.f32 %v558_v54, 0.0 }
 0x190   : > { %v728_v0 = vmax.f32 %v610_v57, 0.0  ;;  %v698_v2 = vmax.f32 %v560_v59, 0.0 }
 0x191   : > { %v729_v3 = vmax.f32 %v612_v62, 0.0  ;;  %v699_v5 = vmax.f32 %v562_v63, 0.0 }
 0x192   : > { %v1247_v6 = vpack.c.bf16 %v728_v0, %v725_v56  ;;  %v732_v7 = vpack.c.bf16 %v698_v2, %v695_v1 }
 0x193   : > { %v1249_v8 = vpack.c.bf16 %v729_v3, %v726_v61  ;;  %v733_v9 = vpack.c.bf16 %v699_v5, %v696_v4  ;;  %v565_v10 = vpop.f32.mrb[4].mxu0 }
 0x194   : > { %v566_v11 = vadd.f32 %v565_v10, %v416_v37  ;;  %v567_v12 = vpop.f32.mrb[5].mxu0 }
 0x195   : > { %v568_v14 = vadd.f32 %v567_v12, %v416_v37  ;;  %v569_v15 = vpop.f32.mrb[6].mxu0  ;;  %760 = vmatprep.subr.bf16.mxu1 %v733_v9 }
 0x196   : > { %v570_v16 = vadd.f32 %v569_v15, %v421_v38  ;;  %v571_v18 = vpop.f32.mrb[7].mxu0  ;;  %761 = vmatpush1.bf16.msra.mxu1 %v732_v7  ;;  %v701_v21 = vmax.f32 %v566_v11, 0.0 }
 0x197   : > { %v954_v19 = vpop.f32.mrb[4].mxu1  ;;  %v572_v20 = vadd.f32 %v571_v18, %v421_v38  ;;  %v702_v13 = vmax.f32 %v568_v14, 0.0 }
 0x198   : > { %v657_v22 = vadd.f32 %v954_v19, %v416_v37  ;;  %v704_v23 = vmax.f32 %v570_v16, 0.0  ;;  %v648_v24 = vpop.f32.mrb[5].mxu1 }
 0x199   : > { %v649_v25 = vadd.f32 %v648_v24, %v406_v36  ;;  %v705_v26 = vmax.f32 %v572_v20, 0.0  ;;  %v955_v27 = vpop.f32.mrb[6].mxu1 }
 0x19a   : > { %v703_v28 = vmax.f32 %v657_v22, 0.0  ;;  %v735_v29 = vpack.c.bf16 %v704_v23, %v701_v21  ;;  %v660_v30 = vadd.f32 %v955_v27, %v421_v38  ;;  %v651_v31 = vpop.f32.mrb[7].mxu1 }
 0x19b   : > { %v697_v32 = vmax.f32 %v649_v25, 0.0  ;;  %v736_v33 = vpack.c.bf16 %v705_v26, %v702_v13  ;;  %v652_v46 = vadd.f32 %v651_v31, %v1223_v35  ;;  %v575_v47 = vpop.f32.mrb[8].mxu0 }
 0x19c   : > { %v706_v48 = vmax.f32 %v660_v30, 0.0  ;;  %v576_v49 = vadd.f32 %v575_v47, %v1225_v39  ;;  %v577_v50 = vpop.f32.mrb[9].mxu0 }
 0x19d   : > { %v700_v37 = vmax.f32 %v652_v46, 0.0  ;;  %v578_v51 = vadd.f32 %v577_v50, %v1225_v39  ;;  %v579_v52 = vpop.f32.mrb[10].mxu0  ;;  %762 = vmatprep.subr.bf16.mxu1 %v736_v33 }
 0x19e   : > { %v737_v36 = vpack.c.bf16 %v706_v48, %v703_v28  ;;  %v580_v53 = vadd.f32 %v579_v52, %v1227_v40  ;;  %v581_v54 = vpop.f32.mrb[11].mxu0  ;;  %763 = vmatpush1.bf16.msra.mxu1 %v735_v29  ;;  %v707_v35 = vmax.f32 %v576_v49, 0.0 }
 0x19f   : > { %v734_v38 = vpack.c.bf16 %v700_v37, %v697_v32  ;;  %v582_v55 = vadd.f32 %v581_v54, %v1227_v40  ;;  %v958_v56 = vpop.f32.mrb[8].mxu1  ;;  %v708_v60 = vmax.f32 %v578_v51, 0.0 }
 0x1a0   : > { %v710_v57 = vmax.f32 %v580_v53, 0.0  ;;  %v673_v58 = vadd.f32 %v958_v56, %v1229_v41  ;;  %v664_v59 = vpop.f32.mrb[9].mxu1 }
 0x1a1   : > { %v711_v61 = vmax.f32 %v582_v55, 0.0  ;;  %v665_v62 = vadd.f32 %v664_v59, %v1225_v39  ;;  %v959_v63 = vpop.f32.mrb[10].mxu1  ;;  %965 = vmatpush3.bf16.msra.mxu0 %v734_v38 }
 0x1a2   : > { %v738_v0 = vpack.c.bf16 %v710_v57, %v707_v35  ;;  %v676_v1 = vadd.f32 %v959_v63, %v1231_v17  ;;  %v667_v2 = vpop.f32.mrb[11].mxu1  ;;  %966 = vmatprep.subr.bf16.mxu0 %v1037_v34  ;;  %v715_v7 = vmax.f32 %v673_v58, 0.0  ;;  %v731_v57 = vld [vmem:[%s1292_s3] sm:$0xf] }
 0x1a3   : > { %v739_v3 = vpack.c.bf16 %v711_v61, %v708_v60  ;;  %v668_v4 = vadd.f32 %v667_v2, %v1227_v40  ;;  %v585_v5 = vpop.f32.mrb[12].mxu0  ;;  %v709_v12 = vmax.f32 %v665_v62, 0.0 }
 0x1a4   : > { %v718_v9 = vmax.f32 %v676_v1, 0.0  ;;  %v586_v10 = vadd.f32 %v585_v5, %v1229_v41  ;;  %v587_v11 = vpop.f32.mrb[13].mxu0 }
 0x1a5   : > { %v712_v14 = vmax.f32 %v668_v4, 0.0  ;;  %v588_v39 = vadd.f32 %v587_v11, %v1229_v41  ;;  %v589_v15 = vpop.f32.mrb[14].mxu0  ;;  %764 = vmatprep.subr.bf16.mxu1 %v739_v3  ;;  %967 = vmatpush3.bf16.msra.mxu0 %v737_v36 }
 0x1a6   : > { %v743_v16 = vpack.c.bf16 %v718_v9, %v715_v7  ;;  %v590_v18 = vadd.f32 %v589_v15, %v1231_v17  ;;  %v591_v19 = vpop.f32.mrb[15].mxu0  ;;  %765 = vmatpush1.bf16.msra.mxu1 %v738_v0  ;;  %968 = vmatprep.subr.bf16.mxu0 %v1037_v34  ;;  %v713_v22 = vmax.f32 %v586_v10, 0.0 }
 0x1a7   : > { %v740_v40 = vpack.c.bf16 %v712_v14, %v709_v12  ;;  %v592_v20 = vadd.f32 %v591_v19, %v1231_v17  ;;  %v962_v21 = vpop.f32.mrb[12].mxu1  ;;  %v714_v41 = vmax.f32 %v588_v39, 0.0 }
 0x1a8   : > { %v716_v23 = vmax.f32 %v590_v18, 0.0  ;;  %v689_v24 = vadd.f32 %v962_v21, %v1237_v44  ;;  %v680_v13 = vpop.f32.mrb[13].mxu1 }
 0x1a9   : > { %v717_v25 = vmax.f32 %v592_v20, 0.0  ;;  %v681_v26 = vadd.f32 %v680_v13, %v1233_v42  ;;  %v963_v27 = vpop.f32.mrb[14].mxu1  ;;  %969 = vmatpush3.bf16.msra.mxu0 %v740_v40 }
 0x1aa   : > { %v741_v28 = vpack.c.bf16 %v716_v23, %v713_v22  ;;  %v692_v29 = vadd.f32 %v963_v27, %v1239_v45  ;;  %v683_v30 = vpop.f32.mrb[15].mxu1  ;;  %970 = vmatprep.subr.bf16.mxu0 %v1037_v34  ;;  %v727_v33 = vmax.f32 %v689_v24, 0.0 }
 0x1ab   : > { %v742_v31 = vpack.c.bf16 %v717_v25, %v714_v41  ;;  %v684_v17 = vadd.f32 %v683_v30, %v1235_v43  ;;  %v595_v32 = vpop.f32.mrb[16].mxu0  ;;  %v721_v48 = vmax.f32 %v681_v26, 0.0 }
 0x1ac   : > { %v730_v46 = vmax.f32 %v692_v29, 0.0  ;;  %v596_v44 = vadd.f32 %v595_v32, %v1233_v42  ;;  %v597_v47 = vpop.f32.mrb[17].mxu0 }
 0x1ad   : > { %v724_v49 = vmax.f32 %v684_v17, 0.0  ;;  %v598_v50 = vadd.f32 %v597_v47, %v1233_v42  ;;  %v599_v37 = vpop.f32.mrb[18].mxu0  ;;  %766 = vmatprep.subr.bf16.mxu1 %v742_v31  ;;  %971 = vmatpush3.bf16.msra.mxu0 %v743_v16 }
 0x1ae   : > { %v749_v45 = vpack.c.bf16 %v730_v46, %v727_v33  ;;  %v600_v51 = vadd.f32 %v599_v37, %v1235_v43  ;;  %v601_v52 = vpop.f32.mrb[19].mxu0  ;;  %767 = vmatpush1.bf16.msra.mxu1 %v741_v28  ;;  %972 = vmatprep.subr.bf16.mxu0 %v1037_v34  ;;  %v719_v54 = vmax.f32 %v596_v44, 0.0 }
 0x1af   : > { %v746_v36 = vpack.c.bf16 %v724_v49, %v721_v48  ;;  %v602_v53 = vadd.f32 %v601_v52, %v1235_v43  ;;  %v720_v55 = vmax.f32 %v598_v50, 0.0  ;;  %v754_v43 = vpop.permute.xlu1 %753 }
 0x1b0   : > { %v722_v38 = vmax.f32 %v600_v51, 0.0 }
 0x1b1   : > { %v723_v56 = vmax.f32 %v602_v53, 0.0  ;;  %973 = vmatpush3.bf16.msra.mxu0 %v746_v36 }
 0x1b2   : > { %v744_v42 = vpack.c.bf16 %v722_v38, %v719_v54  ;;  %974 = vmatprep.subr.bf16.mxu0 %v1037_v34 }
 0x1b3   : > { %v745_v35 = vpack.c.bf16 %v723_v56, %v720_v55 }
 0x1b5   : > { %768 = vmatprep.subr.bf16.mxu1 %v745_v35  ;;  %975 = vmatpush3.bf16.msra.mxu0 %v749_v45 }
 0x1b6   : > { %769 = vmatpush1.bf16.msra.mxu1 %v744_v42 }
 0x1b7   : > { %770 = vmatprep.subr.bf16.mxu1 %v1249_v8 }
 0x1b8   : > { %977 = vmatmul.mubr.msk.bf16.vlgmr.msra.gmra.mrb[20].mxu0 %vm756_vm13, %v731_v57 }
 0x1ba   : > { %771 = vmatpush1.bf16.msra.mxu1 %v1247_v6 }
 0x1bd   : > { %926 = vmatmul.mubr.msk.bf16.vlgmr.msra.gmra.mrb[16].mxu1 %vm756_vm13, %v731_v57 }
 0x28b   : > { %v835_v58 = vpop.f32.mrb[20].mxu0 }
 0x28c   : > { %v836_v34 = vadd.f32 %v835_v58, %v754_v43  ;;  %v978_v59 = vpop.f32.mrb[21].mxu0 }
 0x28d   : > { %v838_v60 = vpop.f32.mrb[22].mxu0 }
 0x28e   : > { %844 = vst.msk [vmem:[%s224_s29 + $0x10] sm:$0x7f] %vm843_vm14, %v836_v34  ;;  %v979_v61 = vpop.f32.mrb[23].mxu0 }
 0x290   : > { %v794_v62 = vpop.f32.mrb[16].mxu1 }
 0x291   : > { %v795_v63 = vadd.f32 %v794_v62, %v754_v43  ;;  %v796_v8 = vpop.f32.mrb[17].mxu1 }
 0x292   : > { %v797_v0 = vadd.f32 %v796_v8, %v754_v43  ;;  %v798_v1 = vpop.f32.mrb[18].mxu1 }
 0x293   : > { %841 = vst [vmem:[%s224_s29] sm:$0x7f] %v795_v63  ;;  %v799_v6 = vpop.f32.mrb[19].mxu1 }
 0x294   : > { %842 = vst [vmem:[%s224_s29 + $0x8] sm:$0x7f] %v797_v0 }
 0x295 PF: > { %s15_s18 = sadd.s32 1, %s1025_s18  }
 0x296   : > { %p12_p4 = scmp.ge.s32.totalorder %s15_s18, 4  }
 0x298   :  { %14 = sbr.rel (!%p12_p4) target bundleno = 1 (0x1), region = 70 }

</bundles_post_ra>
